<compile_context>
chip_gen: v5e
topology: v5e:2x2
jax: 0.10.0
libtpu: 0.0.40
codegen_flags: <defaults>
</compile_context>

<pallas_src>
import jax
import jax.numpy as jnp
from jax.experimental import pallas as pl
from jax.experimental.pallas import tpu as pltpu

# ---- synthetic "dataset" metadata (df is not available; fixed small sizes) ----
EMBEDDING_DIM_LIST = [3, 2]          # per-categorical-column embedding dims
NUM_EMBEDDINGS_LIST = [5, 7]         # vocab sizes of the two categorical cols
NUM_CATEGORICAL = len(EMBEDDING_DIM_LIST)
NUM_NUMERIC = 6
NUM_FEATURES = NUM_CATEGORICAL + NUM_NUMERIC          # 8 columns in x
COMBINED_DIM = sum(EMBEDDING_DIM_LIST) + NUM_NUMERIC  # 3 + 2 + 6 = 11


def _round_up(n, m):
    return ((n + m - 1) // m) * m


def mixed_model_kernel(x_ref, lut0_ref, lut1_ref, wnum_ref, out_ref):
    """One batch tile, batch along the lane axis.

    x_ref   : VMEM [NUM_FEATURES, TM] f32 (rows 0..1 = category ids, 2.. = numeric)
    lut0_ref: SMEM [V0] f32   folded emb0 @ w[:D0] + bias
    lut1_ref: SMEM [V1] f32   folded emb1 @ w[D0:D0+D1]
    wnum_ref: SMEM [Nn] f32   numeric weight column
    out_ref : VMEM [1, TM] f32
    """
    v0 = lut0_ref.shape[0]
    v1 = lut1_ref.shape[0]

    # numeric features: scalar-weighted sum (pure VPU, tiny unrolled loop)
    acc = x_ref[NUM_CATEGORICAL:NUM_CATEGORICAL + 1, :] * wnum_ref[0]
    for j in range(1, NUM_NUMERIC):
        row = NUM_CATEGORICAL + j
        acc = acc + x_ref[row:row + 1, :] * wnum_ref[j]

    # categorical columns: LUT gather as compare-select sum (VPU, no MXU)
    ids0 = x_ref[0:1, :].astype(jnp.int32)
    for v in range(v0):
        acc = acc + jnp.where(ids0 == v, lut0_ref[v], 0.0)

    ids1 = x_ref[1:2, :].astype(jnp.int32)
    for v in range(v1):
        acc = acc + jnp.where(ids1 == v, lut1_ref[v], 0.0)

    out_ref[...] = acc


def mixed_model_forward(x, emb0, emb1, w, b, *, tm=2048):
    """x: [B, NUM_FEATURES] f32 (first NUM_CATEGORICAL cols hold integer ids)."""
    B, F = x.shape
    D0 = emb0.shape[1]
    D1 = emb1.shape[1]

    # ---- fold embedding tables (and bias) into per-vocab scalar LUTs ----
    lut0 = (emb0.astype(jnp.float32) @ w[:D0, 0:1]).reshape(-1) + b[0]     # [V0]
    lut1 = (emb1.astype(jnp.float32) @ w[D0:D0 + D1, 0:1]).reshape(-1)     # [V1]
    w_num = w[D0 + D1:, 0].astype(jnp.float32)                             # [Nn]

    # ---- lane-dense layout: batch on lanes, features on sublanes ----
    tm_eff = min(tm, _round_up(B, 128))          # 128-aligned tile, <= tm
    b_pad = _round_up(B, tm_eff)
    x_t = jnp.pad(x.astype(jnp.float32).T, ((0, 0), (0, b_pad - B)))       # [F, Bp]

    grid = (b_pad // tm_eff,)
    smem = pltpu.MemorySpace.SMEM

    out_padded = pl.pallas_call(
        mixed_model_kernel,
        out_shape=jax.ShapeDtypeStruct((1, b_pad), jnp.float32),
        grid=grid,
        in_specs=[
            pl.BlockSpec((F, tm_eff), lambda i: (0, i)),   # x (transposed), VMEM
            pl.BlockSpec(memory_space=smem),               # lut0 (+bias)
            pl.BlockSpec(memory_space=smem),               # lut1
            pl.BlockSpec(memory_space=smem),               # numeric weights
        ],
        out_specs=pl.BlockSpec((1, tm_eff), lambda i: (0, i)),
        compiler_params=pltpu.CompilerParams(
            dimension_semantics=("parallel",),
            vmem_limit_bytes=32 * 1024 * 1024,
        ),
        cost_estimate=pl.CostEstimate(
            flops=2 * b_pad * COMBINED_DIM,
            transcendentals=0,
            bytes_accessed=b_pad * (F * 4 + 4),
        ),
    )(x_t, lut0, lut1, w_num)

    return out_padded[0, :B].reshape(B, 1)


def reference_forward(x, emb0, emb1, w, b):
    cat = x[:, :NUM_CATEGORICAL].astype(jnp.int32)
    num = x[:, NUM_CATEGORICAL:].astype(jnp.float32)
    e0 = emb0[cat[:, 0]]
    e1 = emb1[cat[:, 1]]
    combined = jnp.concatenate([e0, e1, num], axis=1)
    return combined @ w + b[None, :]


if __name__ == "__main__":
    key = jax.random.PRNGKey(0)
    k_emb0, k_emb1, k_w, k_b, k_cat0, k_cat1, k_num = jax.random.split(key, 7)

    # Deterministic parameter init (mimics nn.Embedding ~ N(0,1), nn.Linear ~ U).
    emb0 = jax.random.normal(k_emb0, (NUM_EMBEDDINGS_LIST[0], EMBEDDING_DIM_LIST[0]),
                             dtype=jnp.float32)
    emb1 = jax.random.normal(k_emb1, (NUM_EMBEDDINGS_LIST[1], EMBEDDING_DIM_LIST[1]),
                             dtype=jnp.float32)
    bound = 1.0 / (COMBINED_DIM ** 0.5)
    w = jax.random.uniform(k_w, (COMBINED_DIM, 1), minval=-bound, maxval=bound,
                           dtype=jnp.float32)
    b = jax.random.uniform(k_b, (1,), minval=-bound, maxval=bound, dtype=jnp.float32)

    fwd = jax.jit(mixed_model_forward)

    def make_batch(n, keys):
        kc0, kc1, kn = keys
        cat0 = jax.random.randint(kc0, (n, 1), 0, NUM_EMBEDDINGS_LIST[0])
        cat1 = jax.random.randint(kc1, (n, 1), 0, NUM_EMBEDDINGS_LIST[1])
        numeric = jax.random.normal(kn, (n, NUM_NUMERIC), dtype=jnp.float32)
        return jnp.concatenate(
            [cat0.astype(jnp.float32), cat1.astype(jnp.float32), numeric], axis=1)

    # Small batch (module-consistent example input: [cat_id0, cat_id1, 6 numeric]).
    B = 8
    x = make_batch(B, (k_cat0, k_cat1, k_num))
    out = jax.block_until_ready(fwd(x, emb0, emb1, w, b))
    ref = reference_forward(x, emb0, emb1, w, b)
    assert out.shape == (B, 1), out.shape
    assert jnp.allclose(out, ref, atol=1e-5, rtol=1e-5), (out, ref)

    # A second, non-multiple-of-tile batch to exercise the grid + padding path.
    B2 = 1000
    k2 = jax.random.split(jax.random.PRNGKey(1), 3)
    x2 = make_batch(B2, tuple(k2))
    out2 = jax.block_until_ready(fwd(x2, emb0, emb1, w, b))
    ref2 = reference_forward(x2, emb0, emb1, w, b)
    assert out2.shape == (B2, 1), out2.shape
    assert jnp.allclose(out2, ref2, atol=1e-5, rtol=1e-5)

    # A larger batch spanning multiple grid steps with the bigger default tile.
    B3 = 5000
    k3 = jax.random.split(jax.random.PRNGKey(2), 3)
    x3 = make_batch(B3, tuple(k3))
    out3 = jax.block_until_ready(fwd(x3, emb0, emb1, w, b))
    ref3 = reference_forward(x3, emb0, emb1, w, b)
    assert out3.shape == (B3, 1), out3.shape
    assert jnp.allclose(out3, ref3, atol=1e-5, rtol=1e-5)

    print("KERNEL_OK")
</pallas_src>

<mosaic_0001>
module attributes {stable_mosaic.version = 11 : i64} {
  func.func @mixed_model_kernel(%arg0: i32, %arg1: memref<8x128xf32, #tpu.memory_space<vmem>>, %arg2: memref<5xf32, #tpu.memory_space<smem>>, %arg3: memref<7xf32, #tpu.memory_space<smem>>, %arg4: memref<6xf32, #tpu.memory_space<smem>>, %arg5: memref<1x128xf32, #tpu.memory_space<vmem>>) attributes {dimension_semantics = [#tpu.dimension_semantics<parallel>], iteration_bounds = array<i64: 1>, scalar_prefetch = 0 : i64, scratch_operands = 0 : i64, tpu.core_type = #tpu.core_type<tc>, window_params = [{transform_indices = @transform_0, window_bounds = array<i64: 8, 128>}, {transform_indices = @transform_1, window_bounds = array<i64: 5>}, {transform_indices = @transform_2, window_bounds = array<i64: 7>}, {transform_indices = @transform_3, window_bounds = array<i64: 6>}, {transform_indices = @transform_4, window_bounds = array<i64: 1, 128>}]} {
    %c2 = arith.constant 2 : index
    %c0 = arith.constant 0 : index
    %0 = vector.load %arg1[%c2, %c0] : memref<8x128xf32, #tpu.memory_space<vmem>>, vector<1x128xf32>
    %c0_0 = arith.constant 0 : index
    %1 = memref.load %arg4[%c0_0] : memref<6xf32, #tpu.memory_space<smem>>
    %2 = vector.broadcast %1 : f32 to vector<1x128xf32>
    %3 = arith.mulf %0, %2 : vector<1x128xf32>
    %c3 = arith.constant 3 : index
    %c0_1 = arith.constant 0 : index
    %4 = vector.load %arg1[%c3, %c0_1] : memref<8x128xf32, #tpu.memory_space<vmem>>, vector<1x128xf32>
    %c1 = arith.constant 1 : index
    %5 = memref.load %arg4[%c1] : memref<6xf32, #tpu.memory_space<smem>>
    %6 = vector.broadcast %5 : f32 to vector<1x128xf32>
    %7 = arith.mulf %4, %6 : vector<1x128xf32>
    %8 = arith.addf %3, %7 : vector<1x128xf32>
    %c4 = arith.constant 4 : index
    %c0_2 = arith.constant 0 : index
    %9 = vector.load %arg1[%c4, %c0_2] : memref<8x128xf32, #tpu.memory_space<vmem>>, vector<1x128xf32>
    %c2_3 = arith.constant 2 : index
    %10 = memref.load %arg4[%c2_3] : memref<6xf32, #tpu.memory_space<smem>>
    %11 = vector.broadcast %10 : f32 to vector<1x128xf32>
    %12 = arith.mulf %9, %11 : vector<1x128xf32>
    %13 = arith.addf %8, %12 : vector<1x128xf32>
    %c5 = arith.constant 5 : index
    %c0_4 = arith.constant 0 : index
    %14 = vector.load %arg1[%c5, %c0_4] : memref<8x128xf32, #tpu.memory_space<vmem>>, vector<1x128xf32>
    %c3_5 = arith.constant 3 : index
    %15 = memref.load %arg4[%c3_5] : memref<6xf32, #tpu.memory_space<smem>>
    %16 = vector.broadcast %15 : f32 to vector<1x128xf32>
    %17 = arith.mulf %14, %16 : vector<1x128xf32>
    %18 = arith.addf %13, %17 : vector<1x128xf32>
    %c6 = arith.constant 6 : index
    %c0_6 = arith.constant 0 : index
    %19 = vector.load %arg1[%c6, %c0_6] : memref<8x128xf32, #tpu.memory_space<vmem>>, vector<1x128xf32>
    %c4_7 = arith.constant 4 : index
    %20 = memref.load %arg4[%c4_7] : memref<6xf32, #tpu.memory_space<smem>>
    %21 = vector.broadcast %20 : f32 to vector<1x128xf32>
    %22 = arith.mulf %19, %21 : vector<1x128xf32>
    %23 = arith.addf %18, %22 : vector<1x128xf32>
    %c7 = arith.constant 7 : index
    %c0_8 = arith.constant 0 : index
    %24 = vector.load %arg1[%c7, %c0_8] : memref<8x128xf32, #tpu.memory_space<vmem>>, vector<1x128xf32>
    %c5_9 = arith.constant 5 : index
    %25 = memref.load %arg4[%c5_9] : memref<6xf32, #tpu.memory_space<smem>>
    %26 = vector.broadcast %25 : f32 to vector<1x128xf32>
    %27 = arith.mulf %24, %26 : vector<1x128xf32>
    %28 = arith.addf %23, %27 : vector<1x128xf32>
    %c0_10 = arith.constant 0 : index
    %c0_11 = arith.constant 0 : index
    %29 = vector.load %arg1[%c0_10, %c0_11] : memref<8x128xf32, #tpu.memory_space<vmem>>, vector<1x128xf32>
    %30 = arith.fptosi %29 : vector<1x128xf32> to vector<1x128xi32>
    %c0_i32 = arith.constant 0 : i32
    %31 = vector.broadcast %c0_i32 : i32 to vector<1x128xi32>
    %32 = arith.cmpi eq, %30, %31 : vector<1x128xi32>
    %c0_12 = arith.constant 0 : index
    %33 = memref.load %arg2[%c0_12] : memref<5xf32, #tpu.memory_space<smem>>
    %cst = arith.constant 0.000000e+00 : f32
    %34 = vector.broadcast %33 : f32 to vector<1x128xf32>
    %35 = vector.broadcast %cst : f32 to vector<1x128xf32>
    %36 = arith.select %32, %34, %35 : vector<1x128xi1>, vector<1x128xf32>
    %37 = arith.addf %28, %36 : vector<1x128xf32>
    %c1_i32 = arith.constant 1 : i32
    %38 = vector.broadcast %c1_i32 : i32 to vector<1x128xi32>
    %39 = arith.cmpi eq, %30, %38 : vector<1x128xi32>
    %c1_13 = arith.constant 1 : index
    %40 = memref.load %arg2[%c1_13] : memref<5xf32, #tpu.memory_space<smem>>
    %cst_14 = arith.constant 0.000000e+00 : f32
    %41 = vector.broadcast %40 : f32 to vector<1x128xf32>
    %42 = vector.broadcast %cst_14 : f32 to vector<1x128xf32>
    %43 = arith.select %39, %41, %42 : vector<1x128xi1>, vector<1x128xf32>
    %44 = arith.addf %37, %43 : vector<1x128xf32>
    %c2_i32 = arith.constant 2 : i32
    %45 = vector.broadcast %c2_i32 : i32 to vector<1x128xi32>
    %46 = arith.cmpi eq, %30, %45 : vector<1x128xi32>
    %c2_15 = arith.constant 2 : index
    %47 = memref.load %arg2[%c2_15] : memref<5xf32, #tpu.memory_space<smem>>
    %cst_16 = arith.constant 0.000000e+00 : f32
    %48 = vector.broadcast %47 : f32 to vector<1x128xf32>
    %49 = vector.broadcast %cst_16 : f32 to vector<1x128xf32>
    %50 = arith.select %46, %48, %49 : vector<1x128xi1>, vector<1x128xf32>
    %51 = arith.addf %44, %50 : vector<1x128xf32>
    %c3_i32 = arith.constant 3 : i32
    %52 = vector.broadcast %c3_i32 : i32 to vector<1x128xi32>
    %53 = arith.cmpi eq, %30, %52 : vector<1x128xi32>
    %c3_17 = arith.constant 3 : index
    %54 = memref.load %arg2[%c3_17] : memref<5xf32, #tpu.memory_space<smem>>
    %cst_18 = arith.constant 0.000000e+00 : f32
    %55 = vector.broadcast %54 : f32 to vector<1x128xf32>
    %56 = vector.broadcast %cst_18 : f32 to vector<1x128xf32>
    %57 = arith.select %53, %55, %56 : vector<1x128xi1>, vector<1x128xf32>
    %58 = arith.addf %51, %57 : vector<1x128xf32>
    %c4_i32 = arith.constant 4 : i32
    %59 = vector.broadcast %c4_i32 : i32 to vector<1x128xi32>
    %60 = arith.cmpi eq, %30, %59 : vector<1x128xi32>
    %c4_19 = arith.constant 4 : index
    %61 = memref.load %arg2[%c4_19] : memref<5xf32, #tpu.memory_space<smem>>
    %cst_20 = arith.constant 0.000000e+00 : f32
    %62 = vector.broadcast %61 : f32 to vector<1x128xf32>
    %63 = vector.broadcast %cst_20 : f32 to vector<1x128xf32>
    %64 = arith.select %60, %62, %63 : vector<1x128xi1>, vector<1x128xf32>
    %65 = arith.addf %58, %64 : vector<1x128xf32>
    %c1_21 = arith.constant 1 : index
    %c0_22 = arith.constant 0 : index
    %66 = vector.load %arg1[%c1_21, %c0_22] : memref<8x128xf32, #tpu.memory_space<vmem>>, vector<1x128xf32>
    %67 = arith.fptosi %66 : vector<1x128xf32> to vector<1x128xi32>
    %c0_i32_23 = arith.constant 0 : i32
    %68 = vector.broadcast %c0_i32_23 : i32 to vector<1x128xi32>
    %69 = arith.cmpi eq, %67, %68 : vector<1x128xi32>
    %c0_24 = arith.constant 0 : index
    %70 = memref.load %arg3[%c0_24] : memref<7xf32, #tpu.memory_space<smem>>
    %cst_25 = arith.constant 0.000000e+00 : f32
    %71 = vector.broadcast %70 : f32 to vector<1x128xf32>
    %72 = vector.broadcast %cst_25 : f32 to vector<1x128xf32>
    %73 = arith.select %69, %71, %72 : vector<1x128xi1>, vector<1x128xf32>
    %74 = arith.addf %65, %73 : vector<1x128xf32>
    %c1_i32_26 = arith.constant 1 : i32
    %75 = vector.broadcast %c1_i32_26 : i32 to vector<1x128xi32>
    %76 = arith.cmpi eq, %67, %75 : vector<1x128xi32>
    %c1_27 = arith.constant 1 : index
    %77 = memref.load %arg3[%c1_27] : memref<7xf32, #tpu.memory_space<smem>>
    %cst_28 = arith.constant 0.000000e+00 : f32
    %78 = vector.broadcast %77 : f32 to vector<1x128xf32>
    %79 = vector.broadcast %cst_28 : f32 to vector<1x128xf32>
    %80 = arith.select %76, %78, %79 : vector<1x128xi1>, vector<1x128xf32>
    %81 = arith.addf %74, %80 : vector<1x128xf32>
    %c2_i32_29 = arith.constant 2 : i32
    %82 = vector.broadcast %c2_i32_29 : i32 to vector<1x128xi32>
    %83 = arith.cmpi eq, %67, %82 : vector<1x128xi32>
    %c2_30 = arith.constant 2 : index
    %84 = memref.load %arg3[%c2_30] : memref<7xf32, #tpu.memory_space<smem>>
    %cst_31 = arith.constant 0.000000e+00 : f32
    %85 = vector.broadcast %84 : f32 to vector<1x128xf32>
    %86 = vector.broadcast %cst_31 : f32 to vector<1x128xf32>
    %87 = arith.select %83, %85, %86 : vector<1x128xi1>, vector<1x128xf32>
    %88 = arith.addf %81, %87 : vector<1x128xf32>
    %c3_i32_32 = arith.constant 3 : i32
    %89 = vector.broadcast %c3_i32_32 : i32 to vector<1x128xi32>
    %90 = arith.cmpi eq, %67, %89 : vector<1x128xi32>
    %c3_33 = arith.constant 3 : index
    %91 = memref.load %arg3[%c3_33] : memref<7xf32, #tpu.memory_space<smem>>
    %cst_34 = arith.constant 0.000000e+00 : f32
    %92 = vector.broadcast %91 : f32 to vector<1x128xf32>
    %93 = vector.broadcast %cst_34 : f32 to vector<1x128xf32>
    %94 = arith.select %90, %92, %93 : vector<1x128xi1>, vector<1x128xf32>
    %95 = arith.addf %88, %94 : vector<1x128xf32>
    %c4_i32_35 = arith.constant 4 : i32
    %96 = vector.broadcast %c4_i32_35 : i32 to vector<1x128xi32>
    %97 = arith.cmpi eq, %67, %96 : vector<1x128xi32>
    %c4_36 = arith.constant 4 : index
    %98 = memref.load %arg3[%c4_36] : memref<7xf32, #tpu.memory_space<smem>>
    %cst_37 = arith.constant 0.000000e+00 : f32
    %99 = vector.broadcast %98 : f32 to vector<1x128xf32>
    %100 = vector.broadcast %cst_37 : f32 to vector<1x128xf32>
    %101 = arith.select %97, %99, %100 : vector<1x128xi1>, vector<1x128xf32>
    %102 = arith.addf %95, %101 : vector<1x128xf32>
    %c5_i32 = arith.constant 5 : i32
    %103 = vector.broadcast %c5_i32 : i32 to vector<1x128xi32>
    %104 = arith.cmpi eq, %67, %103 : vector<1x128xi32>
    %c5_38 = arith.constant 5 : index
    %105 = memref.load %arg3[%c5_38] : memref<7xf32, #tpu.memory_space<smem>>
    %cst_39 = arith.constant 0.000000e+00 : f32
    %106 = vector.broadcast %105 : f32 to vector<1x128xf32>
    %107 = vector.broadcast %cst_39 : f32 to vector<1x128xf32>
    %108 = arith.select %104, %106, %107 : vector<1x128xi1>, vector<1x128xf32>
    %109 = arith.addf %102, %108 : vector<1x128xf32>
    %c6_i32 = arith.constant 6 : i32
    %110 = vector.broadcast %c6_i32 : i32 to vector<1x128xi32>
    %111 = arith.cmpi eq, %67, %110 : vector<1x128xi32>
    %c6_40 = arith.constant 6 : index
    %112 = memref.load %arg3[%c6_40] : memref<7xf32, #tpu.memory_space<smem>>
    %cst_41 = arith.constant 0.000000e+00 : f32
    %113 = vector.broadcast %112 : f32 to vector<1x128xf32>
    %114 = vector.broadcast %cst_41 : f32 to vector<1x128xf32>
    %115 = arith.select %111, %113, %114 : vector<1x128xi1>, vector<1x128xf32>
    %116 = arith.addf %109, %115 : vector<1x128xf32>
    %c0_42 = arith.constant 0 : index
    %c0_43 = arith.constant 0 : index
    %117 = vector.load %arg5[%c0_42, %c0_43] : memref<1x128xf32, #tpu.memory_space<vmem>>, vector<1x128xf32>
    tpu.vector_store %arg5[%c0_42, %c0_43], %116 {strides = array<i32>} : memref<1x128xf32, #tpu.memory_space<vmem>>, vector<1x128xf32>,
    return
  }
  func.func @transform_0(%arg0: i32) -> (i32, i32) {
    %c0_i32 = arith.constant 0 : i32
    %c0_i32_0 = arith.constant 0 : i32
    return %c0_i32, %arg0 : i32, i32
  }
  func.func @transform_1(%arg0: i32) -> i32 {
    %c0_i32 = arith.constant 0 : i32
    %c0_i32_0 = arith.constant 0 : i32
    return %c0_i32 : i32
  }
  func.func @transform_2(%arg0: i32) -> i32 {
    %c0_i32 = arith.constant 0 : i32
    %c0_i32_0 = arith.constant 0 : i32
    return %c0_i32 : i32
  }
  func.func @transform_3(%arg0: i32) -> i32 {
    %c0_i32 = arith.constant 0 : i32
    %c0_i32_0 = arith.constant 0 : i32
    return %c0_i32 : i32
  }
  func.func @transform_4(%arg0: i32) -> (i32, i32) {
    %c0_i32 = arith.constant 0 : i32
    %c0_i32_0 = arith.constant 0 : i32
    return %c0_i32, %arg0 : i32, i32
  }
}

</mosaic_0001>

<bundles_post_ra>
// kernel: mixed_model_forward.1
= control target key start
LH: loop header
LB: loop body
LE: loop exit
PB: predicated region body
PF: predicated region fallthrough
CT: control target
= control target key end

     0   :  { %9 = vsyncpa [#allocation3], 0  ;;  %s294_s0 = inlined_call_operand.vmem [shape: f32[8,128], index: 0, kind: input, shape index: {}]   ;;  %s295_s1 = inlined_call_operand.vmem [shape: f32[5], index: 1, kind: input, shape index: {}]   ;;  %s296_s2 = inlined_call_operand.vmem [shape: f32[7], index: 2, kind: input, shape index: {}]   ;;  %s297_s3 = inlined_call_operand.vmem [shape: f32[6], index: 3, kind: input, shape index: {}]   ;;  %s298_s4 = inlined_call_operand.vmem [shape: f32[1,128], index: 4, kind: output, shape index: {}]  }
   0x1   :  { %10 = vsyncpa [#allocation5], 0  ;;  %s27_s17 = sshll.u32 %s296_s2, 4  ;;  %s18_s20 = sshll.u32 %s295_s1, 4  ;;  %s28_s17 = int_to_ptr.vmem [resolvable:$true] %s27_s17  ;;  %s19_s20 = int_to_ptr.vmem [resolvable:$true] %s18_s20 }
   0x2   :  { %s221_s21 = smov [#allocation4]   ;;  %s222_s22 = smov [#allocation2]  }
   0x3   :  { %30 = dma.vmem_to_smem %s28_s17, 16, %s221_s21, [#allocation5]  }
   0x4   :  { %21 = dma.vmem_to_smem %s19_s20, 16, %s222_s22, [#allocation3]  }
   0x5   :  { %s36_s25 = sshll.u32 %s297_s3, 4  ;;  %s223_s26 = smov [#allocation6]   ;;  %s37_s25 = int_to_ptr.vmem [resolvable:$true] %s36_s25 }
   0x6   :  { %39 = dma.vmem_to_smem %s37_s25, 16, %s223_s26, [#allocation5]  }
   0x7   :  { %217 = dma.done.wait [#allocation3], 16  }
   0x8   :  { %218 = vsyncadd [#allocation3], 4294967280 }
   0x9   :  { %219 = dma.done.wait [#allocation5], 32  }
   0xa   :  { %220 = vsyncadd [#allocation5], 4294967264 }
   0xb   :  { %52 = sfence }
   0xc   :  { %s54_s2 = sld [smem:[#allocation6]]  ;;  %v82_v0 = vld [vmem:[%s294_s0] sm:$0x1]  ;;  %v53_v1 = vld [vmem:[%s294_s0 + $0x2] sm:$0x1] }
   0xd   :  { %s153_s27 = sld [smem:[#allocation6 + $0x1]]  ;;  %vm168_vm0 = vcmp.lt.s32.totalorder %v82_v0, 0  ;;  %v169_v2 = vceil.f32 %v82_v0  ;;  %v170_v3 = vfloor.f32 %v82_v0  ;;  %v57_v4 = vld [vmem:[%s294_s0 + $0x3] sm:$0x1]  ;;  %v62_v6 = vld [vmem:[%s294_s0 + $0x4] sm:$0x1] }
   0xe   :  { %s154_s1 = sld [smem:[#allocation6 + $0x2]]  ;;  %v67_v9 = vld [vmem:[%s294_s0 + $0x5] sm:$0x1]  ;;  %v72_v15 = vld [vmem:[%s294_s0 + $0x6] sm:$0x1] }
   0xf   :  { %s155_s28 = sld [smem:[#allocation6 + $0x3]]  ;;  %v171_v10 = vsel %vm168_vm0, %v169_v2, %v170_v3  ;;  %v109_v20 = vld [vmem:[%s294_s0 + $0x1] sm:$0x1]  ;;  %v77_v21 = vld [vmem:[%s294_s0 + $0x7] sm:$0x1] }
  0x10   :  { %s156_s3 = sld [smem:[#allocation6 + $0x4]]  ;;  %v172_v19 = vcvt.f32.s32 %v171_v10  ;;  %vm173_vm1 = vcmp.lt.s32.totalorder %v109_v20, 0  ;;  %v174_v25 = vceil.f32 %v109_v20  ;;  %v175_v26 = vfloor.f32 %v109_v20 }
  0x11   :  { %s157_s9 = sld [smem:[#allocation6 + $0x5]] }
  0x12   :  { %v55_v5 = vstv %s54_s2  ;;  %s270_s12 = sld [smem:[#allocation2]]  ;;  %vm84_vm2 = vcmp.eq.s32.totalorder %v172_v19, 0  ;;  %vm89_vm3 = vcmp.eq.s32.totalorder %v172_v19, 1  ;;  %v176_v33 = vsel %vm173_vm1, %v174_v25, %v175_v26 }
  0x13   :  { %v56_v7 = vmul.f32 %v55_v5, %v53_v1  ;;  %v59_v8 = vstv %s153_s27  ;;  %s275_s15 = sld [smem:[#allocation2 + $0x1]]  ;;  %vm94_vm4 = vcmp.eq.s32.totalorder %v172_v19, 2  ;;  %vm99_vm5 = vcmp.eq.s32.totalorder %v172_v19, 3 }
  0x14   :  { %v60_v11 = vmul.f32 %v59_v8, %v57_v4  ;;  %v64_v12 = vstv %s154_s1  ;;  %s280_s18 = sld [smem:[#allocation2 + $0x2]]  ;;  %v177_v39 = vcvt.f32.s32 %v176_v33  ;;  %vm104_vm6 = vcmp.eq.s32.totalorder %v172_v19, 4 }
  0x15   :  { %v65_v13 = vmul.f32 %v64_v12, %v62_v6  ;;  %v69_v14 = vstv %s155_s28  ;;  %s160_s23 = sld [smem:[#allocation2 + $0x3]] }
  0x16   :  { %v61_v16 = vadd.f32 %v60_v11, %v56_v7  ;;  %v70_v17 = vmul.f32 %v69_v14, %v67_v9  ;;  %v74_v18 = vstv %s156_s3  ;;  %s161_s24 = sld [smem:[#allocation2 + $0x4]]  ;;  %vm111_vm7 = vcmp.eq.s32.totalorder %v177_v39, 0 }
  0x17   :  { %v79_v22 = vstv %s157_s9  ;;  %v75_v24 = vmul.f32 %v74_v18, %v72_v15  ;;  %s112_s25 = sld [smem:[#allocation4]]  ;;  %vm116_vm8 = vcmp.eq.s32.totalorder %v177_v39, 1  ;;  %vm121_vm9 = vcmp.eq.s32.totalorder %v177_v39, 2 }
  0x18   :  { %v66_v23 = vadd.f32 %v65_v13, %v61_v16  ;;  %v80_v28 = vmul.f32 %v79_v22, %v77_v21  ;;  %v86_v29 = vstv %s270_s12  ;;  %s162_s0 = sld [smem:[#allocation4 + $0x1]]  ;;  %vm126_vm10 = vcmp.eq.s32.totalorder %v177_v39, 3 }
  0x19   :  { %v91_v31 = vstv %s275_s15  ;;  %v87_v32 = vsel %vm84_vm2, %v86_v29, 0.0  ;;  %s163_s26 = sld [smem:[#allocation4 + $0x2]]  ;;  %vm131_vm11 = vcmp.eq.s32.totalorder %v177_v39, 4  ;;  %vm136_vm12 = vcmp.eq.s32.totalorder %v177_v39, 5 }
  0x1a   :  { %v71_v27 = vadd.f32 %v70_v17, %v66_v23  ;;  %v96_v35 = vstv %s280_s18  ;;  %v92_v36 = vsel %vm89_vm3, %v91_v31, 0.0  ;;  %s164_s2 = sld [smem:[#allocation4 + $0x3]]  ;;  %vm141_vm13 = vcmp.eq.s32.totalorder %v177_v39, 6 }
  0x1b   :  { %v101_v38 = vstv %s160_s23  ;;  %v97_v40 = vsel %vm94_vm4, %v96_v35, 0.0  ;;  %s165_s27 = sld [smem:[#allocation4 + $0x4]] }
  0x1c   :  { %v76_v30 = vadd.f32 %v75_v24, %v71_v27  ;;  %v106_v42 = vstv %s161_s24  ;;  %v102_v43 = vsel %vm99_vm5, %v101_v38, 0.0  ;;  %s166_s1 = sld [smem:[#allocation4 + $0x5]] }
  0x1d   :  { %v113_v45 = vstv %s112_s25  ;;  %v107_v46 = vsel %vm104_vm6, %v106_v42, 0.0  ;;  %s167_s28 = sld [smem:[#allocation4 + $0x6]] }
  0x1e   :  { %v81_v34 = vadd.f32 %v80_v28, %v76_v30  ;;  %v118_v48 = vstv %s162_s0  ;;  %v114_v49 = vsel %vm111_vm7, %v113_v45, 0.0 }
  0x1f   :  { %v123_v51 = vstv %s163_s26  ;;  %v119_v52 = vsel %vm116_vm8, %v118_v48, 0.0 }
  0x20   :  { %v88_v37 = vadd.f32 %v87_v32, %v81_v34  ;;  %v128_v54 = vstv %s164_s2  ;;  %v124_v55 = vsel %vm121_vm9, %v123_v51, 0.0 }
  0x21   :  { %v133_v57 = vstv %s165_s27  ;;  %v129_v58 = vsel %vm126_vm10, %v128_v54, 0.0 }
  0x22   :  { %v93_v41 = vadd.f32 %v92_v36, %v88_v37  ;;  %v138_v60 = vstv %s166_s1  ;;  %v134_v61 = vsel %vm131_vm11, %v133_v57, 0.0 }
  0x23   :  { %v143_v63 = vstv %s167_s28  ;;  %v139_v0 = vsel %vm136_vm12, %v138_v60, 0.0 }
  0x24   :  { %v98_v44 = vadd.f32 %v97_v40, %v93_v41  ;;  %v144_v2 = vsel %vm141_vm13, %v143_v63, 0.0 }
  0x26   :  { %v103_v47 = vadd.f32 %v102_v43, %v98_v44 }
  0x28   :  { %v108_v50 = vadd.f32 %v107_v46, %v103_v47 }
  0x2a   :  { %v115_v53 = vadd.f32 %v114_v49, %v108_v50 }
  0x2c   :  { %v120_v56 = vadd.f32 %v119_v52, %v115_v53 }
  0x2e   :  { %v125_v59 = vadd.f32 %v124_v55, %v120_v56 }
  0x30   :  { %v130_v62 = vadd.f32 %v129_v58, %v125_v59 }
  0x32   :  { %v135_v1 = vadd.f32 %v134_v61, %v130_v62 }
  0x34   :  { %v140_v3 = vadd.f32 %v139_v0, %v135_v1 }
  0x36   :  { %v145_v4 = vadd.f32 %v144_v2, %v140_v3 }
  0x38   :  { %146 = vst [vmem:[%s298_s4] sm:$0x1] %v145_v4 }
  0x39   :  { %151 = vsyncpa [#allocation3], 1 }
  0x3a   :  { %152 = vsyncpa [#allocation5], 1 }

</bundles_post_ra>
